<compile_context>
chip_gen: v7x
topology: tpu7x:2x2x1
jax: 0.10.0
libtpu: 0.0.40
codegen_flags: <defaults>
</compile_context>

<pallas_src>
import functools

import jax
import jax.numpy as jnp
from jax import lax
from jax.experimental import pallas as pl
from jax.experimental.pallas import tpu as pltpu


def _round_up(x, m):
    return (x + m - 1) // m * m


def _bert_self_output_kernel(x_ref, res_ref, w_ref, p_ref, o_ref, *,
                             eps, matmul_dtype):
    # x_ref:   (tm, H)  activation tile (native dtype; cast for MXU in-kernel)
    # res_ref: (tm, H)  residual tile (native dtype)
    # w_ref:   (H, H)   dense weight in (in, out) layout, MXU operand dtype
    # p_ref:   (3, H)   f32 packed params: row0=bias, row1=gamma, row2=beta
    # o_ref:   (tm, H)  output tile
    x = x_ref[...]
    if matmul_dtype is not None and x.dtype != matmul_dtype:
        x = x.astype(matmul_dtype)                       # free VPU cast under MXU
    h = jnp.dot(x, w_ref[...], preferred_element_type=jnp.float32)   # MXU, f32 acc

    bias = p_ref[0:1, :]
    gamma = p_ref[1:2, :]
    beta = p_ref[2:3, :]

    # bias + residual add and LayerNorm, all statistics in f32 (one pass).
    s = h + bias + res_ref[...].astype(jnp.float32)
    mean = jnp.mean(s, axis=-1, keepdims=True)
    mean_sq = jnp.mean(s * s, axis=-1, keepdims=True)
    var = jnp.maximum(mean_sq - mean * mean, 0.0)
    inv = lax.rsqrt(var + eps)                           # EUP slot (free vs MXU)
    o_ref[...] = ((s - mean) * inv * gamma + beta).astype(o_ref.dtype)


def prepare_bert_self_output_params(w, b, gamma, beta, *, matmul_dtype=jnp.bfloat16):
    """One-time parameter prep (do at load time, NOT per forward call):
    transpose the PyTorch (out, in) weight to (in, out), cast it to the MXU
    operand dtype, and pack bias/gamma/beta into a single f32 (3, H) slab."""
    w_t = jnp.asarray(w).T
    if matmul_dtype is not None:
        w_t = w_t.astype(matmul_dtype)
    packed = jnp.stack(
        [jnp.asarray(b), jnp.asarray(gamma), jnp.asarray(beta)]
    ).astype(jnp.float32)
    return w_t, packed


def _choose_tm(tm_req, n_tokens):
    """MXU-friendly token-tile size: multiples of 256 (or 128), never < 16,
    capped so that large inputs produce >= 2 grid steps (both v7x TCs busy)."""
    tm = min(tm_req, _round_up(n_tokens, 16))
    if n_tokens > 256:
        tm = min(tm, _round_up(pl.cdiv(n_tokens, 2), 256))
    if tm >= 256:
        tm = _round_up(tm, 256)
    elif tm >= 128:
        tm = _round_up(tm, 128)
    else:
        tm = _round_up(max(tm, 16), 16)
    return tm


def bert_self_output(hidden_states, input_tensor, w_t, packed_params, *,
                     eps, tm=256, out_dtype=None,
                     vmem_limit_bytes=48 * 1024 * 1024):
    """hidden_states, input_tensor: [..., H] (native dtype, no wrapper casts).
    w_t: (H, H) in (in, out) layout; packed_params: (3, H) = [bias; gamma; beta]
    (both produced by prepare_bert_self_output_params)."""
    orig_shape = hidden_states.shape
    H = orig_shape[-1]
    assert w_t.shape == (H, H)
    assert packed_params.shape == (3, H)
    assert H % 128 == 0, "hidden size must be a multiple of the 128 lane width"

    x = hidden_states.reshape(-1, H)
    res = input_tensor.reshape(-1, H)
    N = x.shape[0]

    tm = _choose_tm(tm, N)
    grid = (pl.cdiv(N, tm),)          # ragged last block handled by Pallas masking
    out_dtype = hidden_states.dtype if out_dtype is None else out_dtype

    kernel = functools.partial(_bert_self_output_kernel, eps=eps,
                               matmul_dtype=w_t.dtype)

    out = pl.pallas_call(
        kernel,
        out_shape=jax.ShapeDtypeStruct((N, H), out_dtype),
        grid_spec=pltpu.PrefetchScalarGridSpec(
            num_scalar_prefetch=0,
            grid=grid,
            in_specs=[
                pl.BlockSpec((tm, H), lambda i: (i, 0)),   # activations
                pl.BlockSpec((tm, H), lambda i: (i, 0)),   # residual
                # Weight is constant across the grid: single resident copy.
                pl.BlockSpec((H, H), lambda i: (0, 0),
                             pipeline_mode=pl.Buffered(1)),
                pl.BlockSpec((3, H), lambda i: (0, 0)),    # bias/gamma/beta slab
            ],
            out_specs=pl.BlockSpec((tm, H), lambda i: (i, 0)),
        ),
        compiler_params=pltpu.CompilerParams(
            dimension_semantics=("parallel",),
            vmem_limit_bytes=vmem_limit_bytes),
    )(x, res, w_t, packed_params)

    return out.reshape(orig_shape[:-1] + (H,))


def _reference(hidden_states, input_tensor, w, b, gamma, beta, *, eps,
               matmul_dtype=None):
    """Pure-JAX reference of the PyTorch module (optionally with the same
    bf16 matmul operands + f32 accumulation as the kernel)."""
    x = hidden_states
    w_t = w.T
    if matmul_dtype is not None:
        x = x.astype(matmul_dtype)
        w_t = w_t.astype(matmul_dtype)
    h = jnp.dot(x, w_t, preferred_element_type=jnp.float32) + b
    s = h + input_tensor.astype(jnp.float32)
    mean = jnp.mean(s, axis=-1, keepdims=True)
    var = jnp.mean((s - mean) ** 2, axis=-1, keepdims=True)
    y = (s - mean) * lax.rsqrt(var + eps) * gamma + beta
    return y.astype(hidden_states.dtype)


if __name__ == "__main__":
    # Small shapes consistent with the module (module default hidden=3072;
    # we use a small multiple of 128 for the demo).
    batch, seq, hidden = 2, 64, 256
    eps = 1e-6  # matches the module's layer_norm_eps=1e-06

    key = jax.random.PRNGKey(0)
    k1, k2, k3, k4 = jax.random.split(key, 4)

    hidden_states = jax.random.normal(k1, (batch, seq, hidden), dtype=jnp.float32)
    input_tensor = jax.random.normal(k2, (batch, seq, hidden), dtype=jnp.float32)

    # nn.Linear-like parameters (PyTorch (out, in) layout) + LayerNorm affine.
    w = jax.random.normal(k3, (hidden, hidden), dtype=jnp.float32) * (1.0 / hidden ** 0.5)
    b = jax.random.normal(k4, (hidden,), dtype=jnp.float32) * 0.01
    gamma = jnp.ones((hidden,), dtype=jnp.float32)
    beta = jnp.zeros((hidden,), dtype=jnp.float32)

    # One-time parameter prep (transpose + bf16 cast + packing).
    w_t, packed = prepare_bert_self_output_params(w, b, gamma, beta,
                                                  matmul_dtype=jnp.bfloat16)

    out = bert_self_output(hidden_states, input_tensor, w_t, packed, eps=eps)
    out = jax.block_until_ready(out)
    assert out.shape == (batch, seq, hidden)

    # Check against a reference using the same bf16 matmul operands (tight tol) ...
    ref_bf16 = _reference(hidden_states, input_tensor, w, b, gamma, beta,
                          eps=eps, matmul_dtype=jnp.bfloat16)
    assert jnp.allclose(out, ref_bf16, atol=2e-3, rtol=2e-3), "mismatch vs bf16 reference"
    # ... and against the full-f32 module semantics (loose tol for bf16 operands).
    ref_f32 = _reference(hidden_states, input_tensor, w, b, gamma, beta, eps=eps)
    assert jnp.allclose(out, ref_f32, atol=5e-2, rtol=5e-2), "mismatch vs f32 reference"

    print("KERNEL_OK")
</pallas_src>

<mosaic_0001>
module attributes {stable_mosaic.version = 11 : i64} {
  func.func @_bert_self_output_kernel(%arg0: i32, %arg1: memref<128x256xf32, #tpu.memory_space<vmem>>, %arg2: memref<128x256xf32, #tpu.memory_space<vmem>>, %arg3: memref<256x256xbf16, #tpu.memory_space<vmem>>, %arg4: memref<3x256xf32, #tpu.memory_space<vmem>>, %arg5: memref<128x256xf32, #tpu.memory_space<vmem>>) attributes {dimension_semantics = [#tpu.dimension_semantics<parallel>], iteration_bounds = array<i64: 1>, scalar_prefetch = 0 : i64, scratch_operands = 0 : i64, tpu.core_type = #tpu.core_type<tc>, window_params = [{transform_indices = @transform_0, window_bounds = array<i64: 128, 256>}, {transform_indices = @transform_1, window_bounds = array<i64: 128, 256>}, {pipeline_mode = #tpu.pipeline_mode<synchronous>, transform_indices = @transform_2, window_bounds = array<i64: 256, 256>}, {pipeline_mode = #tpu.pipeline_mode<synchronous>, transform_indices = @transform_3, window_bounds = array<i64: 3, 256>}, {transform_indices = @transform_4, window_bounds = array<i64: 128, 256>}]} {
    %c0 = arith.constant 0 : index
    %c0_0 = arith.constant 0 : index
    %0 = vector.load %arg1[%c0, %c0_0] : memref<128x256xf32, #tpu.memory_space<vmem>>, vector<128x256xf32>
    %1 = arith.truncf %0 : vector<128x256xf32> to vector<128x256xbf16>
    %c0_1 = arith.constant 0 : index
    %c0_2 = arith.constant 0 : index
    %2 = vector.load %arg3[%c0_1, %c0_2] : memref<256x256xbf16, #tpu.memory_space<vmem>>, vector<256x256xbf16>
    %cst = arith.constant dense<0.000000e+00> : vector<128x256xf32>
    %3 = tpu.matmul %1, %2, %cst {dimension_numbers = #tpu.dot_dimension_numbers<[1], [0], [0], [1], [0, 0, 1, 1], [], []>} : vector<128x256xbf16>, vector<256x256xbf16>, vector<128x256xf32> -> vector<128x256xf32>
    %c0_3 = arith.constant 0 : index
    %c0_4 = arith.constant 0 : index
    %4 = vector.load %arg4[%c0_3, %c0_4] : memref<3x256xf32, #tpu.memory_space<vmem>>, vector<1x256xf32>
    %c1 = arith.constant 1 : index
    %c0_5 = arith.constant 0 : index
    %5 = vector.load %arg4[%c1, %c0_5] : memref<3x256xf32, #tpu.memory_space<vmem>>, vector<1x256xf32>
    %c2 = arith.constant 2 : index
    %c0_6 = arith.constant 0 : index
    %6 = vector.load %arg4[%c2, %c0_6] : memref<3x256xf32, #tpu.memory_space<vmem>>, vector<1x256xf32>
    %7 = vector.broadcast %4 : vector<1x256xf32> to vector<128x256xf32>
    %8 = arith.addf %3, %7 : vector<128x256xf32>
    %c0_7 = arith.constant 0 : index
    %c0_8 = arith.constant 0 : index
    %9 = vector.load %arg2[%c0_7, %c0_8] : memref<128x256xf32, #tpu.memory_space<vmem>>, vector<128x256xf32>
    %10 = arith.addf %8, %9 : vector<128x256xf32>
    %cst_9 = arith.constant dense<0.000000e+00> : vector<128xf32>
    %11 = vector.multi_reduction <add>, %10, %cst_9 [1] : vector<128x256xf32> to vector<128xf32>
    %12 = vector.shape_cast %11 : vector<128xf32> to vector<128x1xf32>
    %cst_10 = arith.constant 2.560000e+02 : f32
    %13 = vector.broadcast %cst_10 : f32 to vector<128x1xf32>
    %14 = arith.divf %12, %13 : vector<128x1xf32>
    %15 = arith.mulf %10, %10 : vector<128x256xf32>
    %cst_11 = arith.constant dense<0.000000e+00> : vector<128xf32>
    %16 = vector.multi_reduction <add>, %15, %cst_11 [1] : vector<128x256xf32> to vector<128xf32>
    %17 = vector.shape_cast %16 : vector<128xf32> to vector<128x1xf32>
    %cst_12 = arith.constant 2.560000e+02 : f32
    %18 = vector.broadcast %cst_12 : f32 to vector<128x1xf32>
    %19 = arith.divf %17, %18 : vector<128x1xf32>
    %20 = arith.mulf %14, %14 : vector<128x1xf32>
    %21 = arith.subf %19, %20 : vector<128x1xf32>
    %cst_13 = arith.constant 0.000000e+00 : f32
    %22 = vector.broadcast %cst_13 : f32 to vector<128x1xf32>
    %23 = arith.maximumf %21, %22 : vector<128x1xf32>
    %cst_14 = arith.constant 9.99999997E-7 : f32
    %24 = vector.broadcast %cst_14 : f32 to vector<128x1xf32>
    %25 = arith.addf %23, %24 : vector<128x1xf32>
    %26 = math.rsqrt %25 : vector<128x1xf32>
    %27 = vector.broadcast %14 : vector<128x1xf32> to vector<128x256xf32>
    %28 = arith.subf %10, %27 : vector<128x256xf32>
    %29 = vector.broadcast %26 : vector<128x1xf32> to vector<128x256xf32>
    %30 = arith.mulf %28, %29 : vector<128x256xf32>
    %31 = vector.broadcast %5 : vector<1x256xf32> to vector<128x256xf32>
    %32 = arith.mulf %30, %31 : vector<128x256xf32>
    %33 = vector.broadcast %6 : vector<1x256xf32> to vector<128x256xf32>
    %34 = arith.addf %32, %33 : vector<128x256xf32>
    %c0_15 = arith.constant 0 : index
    %c0_16 = arith.constant 0 : index
    %35 = vector.load %arg5[%c0_15, %c0_16] : memref<128x256xf32, #tpu.memory_space<vmem>>, vector<128x256xf32>
    tpu.vector_store %arg5[%c0_15, %c0_16], %34 {strides = array<i32>} : memref<128x256xf32, #tpu.memory_space<vmem>>, vector<128x256xf32>,
    return
  }
  func.func @transform_0(%arg0: i32) -> (i32, i32) {
    %c0_i32 = arith.constant 0 : i32
    %c0_i32_0 = arith.constant 0 : i32
    return %arg0, %c0_i32 : i32, i32
  }
  func.func @transform_1(%arg0: i32) -> (i32, i32) {
    %c0_i32 = arith.constant 0 : i32
    %c0_i32_0 = arith.constant 0 : i32
    return %arg0, %c0_i32 : i32, i32
  }
  func.func @transform_2(%arg0: i32) -> (i32, i32) {
    %c0_i32 = arith.constant 0 : i32
    %c0_i32_0 = arith.constant 0 : i32
    %c0_i32_1 = arith.constant 0 : i32
    return %c0_i32, %c0_i32_0 : i32, i32
  }
  func.func @transform_3(%arg0: i32) -> (i32, i32) {
    %c0_i32 = arith.constant 0 : i32
    %c0_i32_0 = arith.constant 0 : i32
    %c0_i32_1 = arith.constant 0 : i32
    return %c0_i32, %c0_i32_0 : i32, i32
  }
  func.func @transform_4(%arg0: i32) -> (i32, i32) {
    %c0_i32 = arith.constant 0 : i32
    %c0_i32_0 = arith.constant 0 : i32
    return %arg0, %c0_i32 : i32, i32
  }
}

</mosaic_0001>

<bundles_post_ra>
// kernel: tpu_custom_call.1
= control target key start
LH: loop header
LB: loop body
LE: loop exit
PB: predicated region body
PF: predicated region fallthrough
CT: control target
= control target key end

     0   :  { %9 = vsyncpa [#allocation3], 0  ;;  %s1711_s0 = inlined_call_operand.hbm [shape: f32[128,256], index: 0, kind: input, shape index: {}]   ;;  %s1712_s1 = inlined_call_operand.hbm [shape: f32[128,256], index: 1, kind: input, shape index: {}]   ;;  %s1713_s2 = inlined_call_operand.hbm [shape: bf16[256,256], index: 2, kind: input, shape index: {}]   ;;  %s1714_s3 = inlined_call_operand.vmem [shape: f32[3,256], index: 3, kind: input, shape index: {}]   ;;  %s1715_s4 = inlined_call_operand.hbm [shape: f32[128,256], index: 4, kind: output, shape index: {}]  }
   0x1   :  { %10 = vsyncpa [#allocation6], 0 }
   0x2   :  { %11 = vsyncpa [#allocation4], 0  ;;  %s1181_s15 = smov [#allocation5]   ;;  %s1182_s17 = smov [#allocation2]  }
   0x3   :  { %s29_s16 = sshll.u32 %s1181_s15, 4  ;;  %s17_s18 = sshll.u32 %s1182_s17, 4  ;;  %s30_s16 = int_to_ptr.vmem [resolvable:$true] %s29_s16  ;;  %s1214_s18 = int_to_ptr.vmem [resolvable:$true] %s17_s18 }
   0x4   :  { %s1087_s21 = scalar_lea.hbm %s1712_s1, 4096 }
   0x5   :  { %p1088_p0 = scmp.ne.s32.totalorder %s1712_s1, %s1087_s21  ;;  %p1091_p1 = scmp.lt.u32.totalorder %s1087_s21, %s1712_s1 }
   0x7   :  { %p1093_p2 = pnand %p1091_p1, %p1088_p0 }
   0x9   :  { %1096 = shalt.err (!%p1093_p2)
}
   0xa   :  { %s1097_s26 = scalar_lea.vmem %s30_s16, 4096  ;;  %p1102_p4 = scmp.lt.s32.totalorder %s30_s16, %s30_s16 }
   0xb   :  { %p1098_p3 = scmp.ne.s32.totalorder %s30_s16, %s1097_s26  ;;  %p1103_p5 = scmp.lt.s32.totalorder %s1097_s26, %s1097_s26 }
   0xd   :  { %p1104_p6 = por %p1103_p5, %p1102_p4 }
   0xf   :  { %p1105_p7 = pnand %p1104_p6, %p1098_p3 }
  0x11   :  { %1108 = shalt.err (!%p1105_p7)
}
  0x12   :  { %s1183_s27 = smov 256   ;;  %s1184_s28 = smov 16  }
  0x13   :  { %35 = dma.hbm_to_vmem [thread:$0]  %s1712_s1, 4096, %s30_s16, [#allocation6], %s1183_s27, %s1183_s27, %s1184_s28  }
  0x14   :  { %s1109_s7 = scalar_lea.hbm %s1711_s0, 4096 }
  0x15   :  { %p1110_p8 = scmp.ne.s32.totalorder %s1711_s0, %s1109_s7  ;;  %p1113_p9 = scmp.lt.u32.totalorder %s1109_s7, %s1711_s0 }
  0x17   :  { %p1115_p10 = pnand %p1113_p9, %p1110_p8 }
  0x19   :  { %1118 = shalt.err (!%p1115_p10)
}
  0x1a   :  { %s1119_s12 = scalar_lea.vmem %s1214_s18, 4096  ;;  %p1124_p12 = scmp.lt.s32.totalorder %s1214_s18, %s1214_s18 }
  0x1b   :  { %p1120_p11 = scmp.ne.s32.totalorder %s1214_s18, %s1119_s12  ;;  %p1125_p13 = scmp.lt.s32.totalorder %s1119_s12, %s1119_s12 }
  0x1d   :  { %p1126_p0 = por %p1125_p13, %p1124_p12 }
  0x1f   :  { %p1127_p1 = pnand %p1126_p0, %p1120_p11 }
  0x21   :  { %1130 = shalt.err (!%p1127_p1)
}
  0x22   :  { %23 = dma.hbm_to_vmem [thread:$0]  %s1711_s0, 4096, %s1214_s18, [#allocation3], %s1183_s27, %s1183_s27, %s1184_s28  }
  0x23   :  { %s1185_s14 = smov [#allocation7]   ;;  %s1131_s19 = scalar_lea.hbm %s1713_s2, 4096 }
  0x24   :  { %s41_s15 = sshll.u32 %s1185_s14, 4  ;;  %p1132_p2 = scmp.ne.s32.totalorder %s1713_s2, %s1131_s19  ;;  %s42_s15 = int_to_ptr.vmem [resolvable:$true] %s41_s15 }
  0x25   :  { %p1135_p3 = scmp.lt.u32.totalorder %s1131_s19, %s1713_s2 }
  0x27   :  { %p1137_p4 = pnand %p1135_p3, %p1132_p2 }
  0x29   :  { %1140 = shalt.err (!%p1137_p4)
}
  0x2a   :  { %s1141_s24 = scalar_lea.vmem %s42_s15, 4096  ;;  %p1146_p6 = scmp.lt.s32.totalorder %s42_s15, %s42_s15 }
  0x2b   :  { %p1142_p5 = scmp.ne.s32.totalorder %s42_s15, %s1141_s24  ;;  %p1147_p7 = scmp.lt.s32.totalorder %s1141_s24, %s1141_s24 }
  0x2d   :  { %p1148_p8 = por %p1147_p7, %p1146_p6 }
  0x2f   :  { %p1149_p9 = pnand %p1148_p8, %p1142_p5 }
  0x31   :  { %1152 = shalt.err (!%p1149_p9)
}
  0x32   :  { %s1186_s0 = smov 128   ;;  %s1187_s18 = smov 8  }
  0x33   :  { %47 = dma.hbm_to_vmem [thread:$0]  %s1713_s2, 4096, %s42_s15, [#allocation6], %s1186_s0, %s1186_s0, %s1187_s18  }
  0x34   :  { %1175 = dma.done.wait [#allocation3], 4096  }
  0x35   :  { %1176 = vsyncadd [#allocation3], 4294963200 }
  0x36   :  { %1177 = dma.done.wait [#allocation6], 8192  }
  0x37   :  { %1178 = vsyncadd [#allocation6], 4294959104  ;;  %v1007_v0 = vld [vmem:[#allocation7 + $0x4] ss:$8 sps:$4 sm:$0xff]   ;;  %v1009_v1 = vld [vmem:[#allocation7] ss:$8 sps:$4 sm:$0xff]  }
  0x38   :  { %315 = vmatprep.subr.bf16.mxu0 %v1007_v0  ;;  %967 = vmatprep.subr.bf16.mxu1 %v1007_v0  ;;  %v1010_v2 = vld [vmem:[#allocation7 + $0x14] ss:$8 sps:$4 sm:$0xff]   ;;  %v1012_v3 = vld [vmem:[#allocation7 + $0x10] ss:$8 sps:$4 sm:$0xff]   ;;  %v1013_v4 = vld [vmem:[#allocation7 + $0x24] ss:$8 sps:$4 sm:$0xff]  }
  0x39   :  { %316 = vmatpush1.bf16.msra.mxu0 %v1009_v1  ;;  %983 = vmatpush1.bf16.msra.mxu1 %v1009_v1  ;;  %v1015_v5 = vld [vmem:[#allocation7 + $0x20] ss:$8 sps:$4 sm:$0xff]   ;;  %v1016_v6 = vld [vmem:[#allocation7 + $0x34] ss:$8 sps:$4 sm:$0xff]   ;;  %v1018_v7 = vld [vmem:[#allocation7 + $0x30] ss:$8 sps:$4 sm:$0xff]  }
  0x3a   :  { %317 = vmatprep.subr.bf16.mxu0 %v1010_v2  ;;  %968 = vmatprep.subr.bf16.mxu1 %v1010_v2  ;;  %v1019_v8 = vld [vmem:[#allocation7 + $0x44] ss:$8 sps:$4 sm:$0xff]   ;;  %v1021_v9 = vld [vmem:[#allocation7 + $0x40] ss:$8 sps:$4 sm:$0xff]   ;;  %v1022_v10 = vld [vmem:[#allocation7 + $0x54] ss:$8 sps:$4 sm:$0xff]  }
  0x3b   :  { %v1024_v11 = vld [vmem:[#allocation7 + $0x50] ss:$8 sps:$4 sm:$0xff]   ;;  %v1025_v12 = vld [vmem:[#allocation7 + $0x64] ss:$8 sps:$4 sm:$0xff]   ;;  %v1027_v18 = vld [vmem:[#allocation7 + $0x60] ss:$8 sps:$4 sm:$0xff]  }
  0x3c   :  { %v60_v13 = vld [vmem:[#allocation2 + $0x8] sm:$0xff]  ;;  %v62_v14 = vld [vmem:[#allocation2 + $0x18] sm:$0xff]  ;;  %v59_v38 = vld [vmem:[#allocation2] sm:$0xff] }
  0x3d   :  { %318 = vmatpush1.bf16.msra.mxu0 %v1012_v3  ;;  %984 = vmatpush1.bf16.msra.mxu1 %v1012_v3  ;;  %v92_v15 = vpack.c.bf16 %v62_v14, %v60_v13  ;;  %v76_v16 = vld [vmem:[#allocation2 + $0x88] sm:$0xff]  ;;  %v78_v17 = vld [vmem:[#allocation2 + $0x98] sm:$0xff]  ;;  %v61_v39 = vld [vmem:[#allocation2 + $0x10] sm:$0xff] }
  0x3e   :  { %319 = vmatprep.subr.bf16.mxu0 %v1013_v4  ;;  %969 = vmatprep.subr.bf16.mxu1 %v1013_v4  ;;  %v100_v19 = vpack.c.bf16 %v78_v17, %v76_v16  ;;  %v1028_v20 = vld [vmem:[#allocation7 + $0x74] ss:$8 sps:$4 sm:$0xff]   ;;  %v1030_v21 = vld [vmem:[#allocation7 + $0x70] ss:$8 sps:$4 sm:$0xff]   ;;  %v1031_v22 = vld [vmem:[#allocation7 + $0x84] ss:$8 sps:$4 sm:$0xff]   ;;  %v91_v46 = vpack.c.bf16 %v61_v39, %v59_v38  ;;  %v145_v16 = vlaneseq }
  0x3f   :  { %347 = vmatprep.mubr.bf16.mxu0 %v92_v15  ;;  %v1033_v23 = vld [vmem:[#allocation7 + $0x80] ss:$8 sps:$4 sm:$0xff]   ;;  %v1034_v24 = vld [vmem:[#allocation7 + $0x94] ss:$8 sps:$4 sm:$0xff]   ;;  %v1036_v25 = vld [vmem:[#allocation7 + $0x90] ss:$8 sps:$4 sm:$0xff]  }
  0x40   :  { %387 = vmatprep.mubr.bf16.mxu1 %v100_v19  ;;  %v1037_v26 = vld [vmem:[#allocation7 + $0xa4] ss:$8 sps:$4 sm:$0xff]   ;;  %v1039_v27 = vld [vmem:[#allocation7 + $0xa0] ss:$8 sps:$4 sm:$0xff]   ;;  %v1040_v28 = vld [vmem:[#allocation7 + $0xb4] ss:$8 sps:$4 sm:$0xff]  }
  0x41   :  { %320 = vmatpush1.bf16.msra.mxu0 %v1015_v5  ;;  %985 = vmatpush1.bf16.msra.mxu1 %v1015_v5  ;;  %v1042_v29 = vld [vmem:[#allocation7 + $0xb0] ss:$8 sps:$4 sm:$0xff]   ;;  %v1043_v30 = vld [vmem:[#allocation7 + $0xc4] ss:$8 sps:$4 sm:$0xff]   ;;  %v1045_v31 = vld [vmem:[#allocation7 + $0xc0] ss:$8 sps:$4 sm:$0xff]  }
  0x42   :  { %321 = vmatprep.subr.bf16.mxu0 %v1016_v6  ;;  %970 = vmatprep.subr.bf16.mxu1 %v1016_v6  ;;  %v1046_v32 = vld [vmem:[#allocation7 + $0xd4] ss:$8 sps:$4 sm:$0xff]   ;;  %v1048_v33 = vld [vmem:[#allocation7 + $0xd0] ss:$8 sps:$4 sm:$0xff]   ;;  %v1049_v34 = vld [vmem:[#allocation7 + $0xe4] ss:$8 sps:$4 sm:$0xff]  }
  0x43   :  { %v1051_v35 = vld [vmem:[#allocation7 + $0xe0] ss:$8 sps:$4 sm:$0xff]   ;;  %v1052_v36 = vld [vmem:[#allocation7 + $0xf4] ss:$8 sps:$4 sm:$0xff]   ;;  %v1054_v37 = vld [vmem:[#allocation7 + $0xf0] ss:$8 sps:$4 sm:$0xff]  }
  0x44   :  { %v75_v40 = vld [vmem:[#allocation2 + $0x80] sm:$0xff]  ;;  %v77_v41 = vld [vmem:[#allocation2 + $0x90] sm:$0xff]  ;;  %v64_v42 = vld [vmem:[#allocation2 + $0x28] sm:$0xff]  ;;  %v146_v17 = vshrl.u32 %v145_v16, 7 }
  0x45   :  { %322 = vmatpush1.bf16.msra.mxu0 %v1018_v7  ;;  %986 = vmatpush1.bf16.msra.mxu1 %v1018_v7  ;;  %v66_v43 = vld [vmem:[#allocation2 + $0x38] sm:$0xff]  ;;  %v80_v44 = vld [vmem:[#allocation2 + $0xa8] sm:$0xff]  ;;  %v99_v47 = vpack.c.bf16 %v77_v41, %v75_v40  ;;  %v63_v50 = vld [vmem:[#allocation2 + $0x20] sm:$0xff] }
  0x46   :  { %323 = vmatprep.subr.bf16.mxu0 %v1019_v8  ;;  %971 = vmatprep.subr.bf16.mxu1 %v1019_v8  ;;  %v82_v45 = vld [vmem:[#allocation2 + $0xb8] sm:$0xff]  ;;  %v94_v48 = vpack.c.bf16 %v66_v43, %v64_v42  ;;  %v65_v51 = vld [vmem:[#allocation2 + $0x30] sm:$0xff]  ;;  %v79_v52 = vld [vmem:[#allocation2 + $0xa0] sm:$0xff] }
  0x47   :  { %v102_v49 = vpack.c.bf16 %v82_v45, %v80_v44  ;;  %v81_v53 = vld [vmem:[#allocation2 + $0xb0] sm:$0xff]  ;;  %v68_v54 = vld [vmem:[#allocation2 + $0x48] sm:$0xff]  ;;  %v70_v55 = vld [vmem:[#allocation2 + $0x58] sm:$0xff]  ;;  %v93_v58 = vpack.c.bf16 %v65_v51, %v63_v50 }
  0x48   :  { %v84_v56 = vld [vmem:[#allocation2 + $0xc8] sm:$0xff]  ;;  %v86_v57 = vld [vmem:[#allocation2 + $0xd8] sm:$0xff]  ;;  %v101_v59 = vpack.c.bf16 %v81_v53, %v79_v52  ;;  %v96_v60 = vpack.c.bf16 %v70_v55, %v68_v54  ;;  %v67_v62 = vld [vmem:[#allocation2 + $0x40] sm:$0xff] }
  0x49   :  { %324 = vmatpush1.bf16.msra.mxu0 %v1021_v9  ;;  %987 = vmatpush1.bf16.msra.mxu1 %v1021_v9  ;;  %v104_v61 = vpack.c.bf16 %v86_v57, %v84_v56  ;;  %v69_v63 = vld [vmem:[#allocation2 + $0x50] sm:$0xff]  ;;  %v83_v0 = vld [vmem:[#allocation2 + $0xc0] sm:$0xff]  ;;  %v72_v2 = vld [vmem:[#allocation2 + $0x68] sm:$0xff] }
  0x4a   :  { %325 = vmatprep.subr.bf16.mxu0 %v1022_v10  ;;  %972 = vmatprep.subr.bf16.mxu1 %v1022_v10  ;;  %v85_v1 = vld [vmem:[#allocation2 + $0xd0] sm:$0xff]  ;;  %v74_v3 = vld [vmem:[#allocation2 + $0x78] sm:$0xff]  ;;  %v88_v4 = vld [vmem:[#allocation2 + $0xe8] sm:$0xff]  ;;  %v95_v6 = vpack.c.bf16 %v69_v63, %v67_v62 }
  0x4b   :  { %v90_v5 = vld [vmem:[#allocation2 + $0xf8] sm:$0xff]  ;;  %v103_v7 = vpack.c.bf16 %v85_v1, %v83_v0  ;;  %v98_v8 = vpack.c.bf16 %v74_v3, %v72_v2  ;;  %v71_v10 = vld [vmem:[#allocation2 + $0x60] sm:$0xff]  ;;  %v89_v13 = vld [vmem:[#allocation2 + $0xf0] sm:$0xff] }
  0x4c   :  { %v106_v9 = vpack.c.bf16 %v90_v5, %v88_v4  ;;  %v139_v19 = vld [vmem:[%s1714_s3] ss:$4 sm:$0x3]  ;;  %v445_v39 = vld [vmem:[#allocation5 + $0x88] sm:$0xff]  ;;  %v431_v43 = vld [vmem:[#allocation5 + $0x18] sm:$0xff] }
  0x4d   :  { %326 = vmatpush1.bf16.msra.mxu0 %v1024_v11  ;;  %988 = vmatpush1.bf16.msra.mxu1 %v1024_v11  ;;  %v73_v11 = vld [vmem:[#allocation2 + $0x70] sm:$0xff]  ;;  %v447_v45 = vld [vmem:[#allocation5 + $0x98] sm:$0xff]  ;;  %v432_v4 = vld [vmem:[#allocation5 + $0x20] sm:$0xff] }
  0x4e   :  { %327 = vmatprep.subr.bf16.mxu0 %v1025_v12  ;;  %973 = vmatprep.subr.bf16.mxu1 %v1025_v12  ;;  %v87_v12 = vld [vmem:[#allocation2 + $0xe0] sm:$0xff]  ;;  %v97_v14 = vpack.c.bf16 %v73_v11, %v71_v10  ;;  %v433_v5 = vld [vmem:[#allocation5 + $0x28] sm:$0xff] }
  0x4f   :  { %v105_v15 = vpack.c.bf16 %v89_v13, %v87_v12 }
  0x51   :  { %328 = vmatpush1.bf16.msra.mxu0 %v1027_v18  ;;  %989 = vmatpush1.bf16.msra.mxu1 %v1027_v18  ;;  %v1263_v18 = vsub.s32 0, %v146_v17 }
  0x52   :  { %329 = vmatprep.subr.bf16.mxu0 %v1028_v20  ;;  %974 = vmatprep.subr.bf16.mxu1 %v1028_v20  ;;  %v1268_v20 = vsub.s32 1, %v146_v17 }
  0x55   :  { %330 = vmatpush1.bf16.msra.mxu0 %v1030_v21  ;;  %990 = vmatpush1.bf16.msra.mxu1 %v1030_v21  ;;  %v1271_v21 = vrot.slane %v139_v19, %v1263_v18 }
  0x56   :  { %331 = vmatprep.subr.bf16.mxu0 %v1031_v22  ;;  %975 = vmatprep.subr.bf16.mxu1 %v1031_v22  ;;  %v1274_v22 = vrot.slane %v139_v19, %v1268_v20 }
  0x59   :  { %332 = vmatpush1.bf16.msra.mxu0 %v1033_v23  ;;  %991 = vmatpush1.bf16.msra.mxu1 %v1033_v23 }
  0x5a   :  { %333 = vmatprep.subr.bf16.mxu0 %v1034_v24  ;;  %976 = vmatprep.subr.bf16.mxu1 %v1034_v24  ;;  %v428_v24 = vld [vmem:[#allocation5] sm:$0xff] }
  0x5d   :  { %334 = vmatpush1.bf16.msra.mxu0 %v1036_v25  ;;  %992 = vmatpush1.bf16.msra.mxu1 %v1036_v25 }
  0x5e   :  { %335 = vmatprep.subr.bf16.mxu0 %v1037_v26  ;;  %977 = vmatprep.subr.bf16.mxu1 %v1037_v26 }
  0x61   :  { %336 = vmatpush1.bf16.msra.mxu0 %v1039_v27  ;;  %993 = vmatpush1.bf16.msra.mxu1 %v1039_v27 }
  0x62   :  { %337 = vmatprep.subr.bf16.mxu0 %v1040_v28  ;;  %978 = vmatprep.subr.bf16.mxu1 %v1040_v28 }
  0x65   :  { %338 = vmatpush1.bf16.msra.mxu0 %v1042_v29  ;;  %994 = vmatpush1.bf16.msra.mxu1 %v1042_v29  ;;  %v429_v29 = vld [vmem:[#allocation5 + $0x8] sm:$0xff] }
  0x66   :  { %339 = vmatprep.subr.bf16.mxu0 %v1043_v30  ;;  %979 = vmatprep.subr.bf16.mxu1 %v1043_v30 }
  0x69   :  { %340 = vmatpush1.bf16.msra.mxu0 %v1045_v31  ;;  %995 = vmatpush1.bf16.msra.mxu1 %v1045_v31  ;;  %v444_v31 = vld [vmem:[#allocation5 + $0x80] sm:$0xff] }
  0x6a   :  { %341 = vmatprep.subr.bf16.mxu0 %v1046_v32  ;;  %980 = vmatprep.subr.bf16.mxu1 %v1046_v32 }
  0x6d   :  { %342 = vmatpush1.bf16.msra.mxu0 %v1048_v33  ;;  %996 = vmatpush1.bf16.msra.mxu1 %v1048_v33 }
  0x6e   :  { %343 = vmatprep.subr.bf16.mxu0 %v1049_v34  ;;  %981 = vmatprep.subr.bf16.mxu1 %v1049_v34 }
  0x71   :  { %344 = vmatpush1.bf16.msra.mxu0 %v1051_v35  ;;  %997 = vmatpush1.bf16.msra.mxu1 %v1051_v35  ;;  %v430_v35 = vld [vmem:[#allocation5 + $0x10] sm:$0xff] }
  0x72   :  { %345 = vmatprep.subr.bf16.mxu0 %v1052_v36  ;;  %982 = vmatprep.subr.bf16.mxu1 %v1052_v36 }
  0x75   :  { %346 = vmatpush1.bf16.msra.mxu0 %v1054_v37  ;;  %998 = vmatpush1.bf16.msra.mxu1 %v1054_v37  ;;  %v446_v37 = vld [vmem:[#allocation5 + $0x90] sm:$0xff] }
  0x78   :  { %348 = vmatmul.mubr.bf16.vlgmr.msra.gmra.mrb[0].mxu0 %v91_v46  ;;  %388 = vmatmul.mubr.bf16.vlgmr.msra.gmra.mrb[0].mxu1 %v99_v47 }
  0x79   :  { %357 = vmatprep.mubr.bf16.mxu0 %v94_v48  ;;  %397 = vmatprep.mubr.bf16.mxu1 %v102_v49 }
  0x80   :  { %358 = vmatmul.mubr.bf16.gmra.mrb[4].mxu0 %v93_v58  ;;  %398 = vmatmul.mubr.bf16.gmra.mrb[4].mxu1 %v101_v59 }
  0x81   :  { %367 = vmatprep.mubr.bf16.mxu0 %v96_v60  ;;  %407 = vmatprep.mubr.bf16.mxu1 %v104_v61 }
  0x88   :  { %368 = vmatmul.mubr.bf16.gmra.mrb[8].mxu0 %v95_v6  ;;  %408 = vmatmul.mubr.bf16.gmra.mrb[8].mxu1 %v103_v7 }
  0x89   :  { %377 = vmatprep.mubr.bf16.mxu0 %v98_v8  ;;  %417 = vmatprep.mubr.bf16.mxu1 %v106_v9 }
  0x90   :  { %378 = vmatmul.mubr.bf16.gmra.mrb[12].mxu0 %v97_v14  ;;  %418 = vmatmul.mubr.bf16.gmra.mrb[12].mxu1 %v105_v15 }
 0x14b   :  { %v349_v23 = vpop.f32.mrb[0].mxu0  ;;  %v389_v25 = vpop.f32.mrb[0].mxu1 }
 0x14c   :  { %v350_v26 = vadd.f32 %v349_v23, %v1271_v21  ;;  %v390_v27 = vadd.f32 %v389_v25, %v1271_v21  ;;  %v351_v28 = vpop.f32.mrb[1].mxu0  ;;  %v391_v30 = vpop.f32.mrb[1].mxu1  ;;  %v448_v23 = vld [vmem:[#allocation5 + $0xa0] sm:$0xff] }
 0x14d   :  { %v352_v32 = vadd.f32 %v351_v28, %v1274_v22  ;;  %v392_v33 = vadd.f32 %v391_v30, %v1274_v22  ;;  %v353_v34 = vpop.f32.mrb[2].mxu0  ;;  %v393_v36 = vpop.f32.mrb[2].mxu1  ;;  %v434_v28 = vld [vmem:[#allocation5 + $0x30] sm:$0xff]  ;;  %v449_v30 = vld [vmem:[#allocation5 + $0xa8] sm:$0xff] }
 0x14e   :  { %v1280_v38 = vadd.f32 %v428_v24, %v350_v26  ;;  %v354_v40 = vadd.f32 %v353_v34, %v1271_v21  ;;  %v394_v41 = vadd.f32 %v393_v36, %v1271_v21  ;;  %v355_v42 = vpop.f32.mrb[3].mxu0  ;;  %v395_v44 = vpop.f32.mrb[3].mxu1  ;;  %v1288_v49 = vadd.f32 %v444_v31, %v390_v27 }
 0x14f   :  { %v1284_v46 = vadd.f32 %v429_v29, %v352_v32  ;;  %v356_v47 = vadd.f32 %v355_v42, %v1274_v22  ;;  %v396_v48 = vadd.f32 %v395_v44, %v1274_v22  ;;  %v1294_v52 = vadd.f32 %v445_v39, %v392_v33  ;;  %v435_v29 = vld [vmem:[#allocation5 + $0x38] sm:$0xff] }
 0x150   :  { %v1290_v50 = vadd.f32 %v430_v35, %v354_v40  ;;  %v1292_v51 = vadd.f32 %v446_v37, %v394_v41  ;;  %v557_v11 = vmul.f32 %v1280_v38, %v1280_v38  ;;  %v573_v35 = vmul.f32 %v1288_v49, %v1288_v49 }
 0x151   :  { %v1296_v53 = vadd.f32 %v431_v43, %v356_v47  ;;  %v1298_v54 = vadd.f32 %v447_v45, %v396_v48  ;;  %v492_v55 = vadd.f32 %v1284_v46, %v1280_v38  ;;  %v516_v1 = vadd.f32 %v1294_v52, %v1288_v49 }
 0x152   :  { %v559_v58 = vmul.f32 %v1290_v50, %v1290_v50  ;;  %v575_v9 = vmul.f32 %v1292_v51, %v1292_v51  ;;  %v558_v15 = vmul.f32 %v1284_v46, %v1284_v46  ;;  %v574_v36 = vmul.f32 %v1294_v52, %v1294_v52 }
 0x153   :  { %493 = vadd.xlane.f32.xlu0 %v492_v55  ;;  %v519_v56 = vadd.f32 %v1298_v54, %v1292_v51  ;;  %v359_v57 = vpop.f32.mrb[4].mxu0  ;;  %v560_v59 = vmul.f32 %v1296_v53, %v1296_v53  ;;  %v399_v60 = vpop.f32.mrb[4].mxu1  ;;  %v576_v10 = vmul.f32 %v1298_v54, %v1298_v54  ;;  %v495_v14 = vadd.f32 %v1296_v53, %v1290_v50  ;;  %v450_v55 = vld [vmem:[#allocation5 + $0xb0] sm:$0xff] }
 0x154   :  { %v361_v61 = vpop.f32.mrb[5].mxu0  ;;  %v401_v62 = vpop.f32.mrb[5].mxu1  ;;  %v360_v63 = vadd.f32 %v359_v57, %v1271_v21  ;;  %v400_v16 = vadd.f32 %v399_v60, %v1271_v21  ;;  %v589_v33 = vadd.f32 %v558_v15, %v557_v11  ;;  %v613_v57 = vadd.f32 %v574_v36, %v573_v35  ;;  %v436_v15 = vld [vmem:[#allocation5 + $0x40] sm:$0xff]  ;;  %v453_v36 = vld [vmem:[#allocation5 + $0xc8] sm:$0xff] }
 0x155   :  { %520 = vadd.xlane.f32.xlu1 %v519_v56  ;;  %v362_v0 = vadd.f32 %v361_v61, %v1274_v22  ;;  %v363_v2 = vpop.f32.mrb[6].mxu0  ;;  %v403_v3 = vpop.f32.mrb[6].mxu1  ;;  %v592_v8 = vadd.f32 %v560_v59, %v559_v58  ;;  %v402_v24 = vadd.f32 %v401_v62, %v1274_v22  ;;  %v616_v25 = vadd.f32 %v576_v10, %v575_v9  ;;  %v451_v56 = vld [vmem:[#allocation5 + $0xb8] sm:$0xff]  ;;  %v452_v35 = vld [vmem:[#allocation5 + $0xc0] sm:$0xff] }
 0x156   :  { %v365_v6 = vpop.f32.mrb[7].mxu0  ;;  %v405_v7 = vpop.f32.mrb[7].mxu1  ;;  %v1318_v12 = vadd.f32 %v432_v4, %v360_v63  ;;  %v364_v17 = vadd.f32 %v363_v2, %v1271_v21  ;;  %v1336_v40 = vadd.f32 %v448_v23, %v400_v16  ;;  %v404_v41 = vadd.f32 %v403_v3, %v1271_v21  ;;  %v437_v16 = vld [vmem:[#allocation5 + $0x48] sm:$0xff] }
 0x157   :  { %517 = vadd.xlane.f32.xlu0 %v516_v1  ;;  %v1320_v13 = vadd.f32 %v433_v5, %v362_v0  ;;  %v366_v19 = vadd.f32 %v365_v6, %v1274_v22  ;;  %v1343_v47 = vadd.f32 %v449_v30, %v402_v24  ;;  %v406_v48 = vadd.f32 %v405_v7, %v1274_v22 }
 0x158   :  { %v1339_v44 = vadd.f32 %v434_v28, %v364_v17  ;;  %v1346_v58 = vadd.f32 %v450_v55, %v404_v41  ;;  %v561_v2 = vmul.f32 %v1318_v12, %v1318_v12  ;;  %v438_v41 = vld [vmem:[#allocation5 + $0x50] sm:$0xff] }
 0x159   :  { %593 = vadd.xlane.f32.xlu1 %v592_v8  ;;  %v498_v34 = vadd.f32 %v1320_v13, %v1318_v12  ;;  %v1341_v45 = vadd.f32 %v435_v29, %v366_v19  ;;  %v1348_v59 = vadd.f32 %v451_v56, %v406_v48  ;;  %v522_v61 = vadd.f32 %v1343_v47, %v1336_v40  ;;  %v439_v48 = vld [vmem:[#allocation5 + $0x58] sm:$0xff] }
 0x15a   :  { %v562_v3 = vmul.f32 %v1320_v13, %v1320_v13  ;;  %v563_v6 = vmul.f32 %v1339_v44, %v1339_v44  ;;  %v577_v19 = vmul.f32 %v1336_v40, %v1336_v40  ;;  %v578_v23 = vmul.f32 %v1343_v47, %v1343_v47 }
 0x15b   :  { %496 = vadd.xlane.f32.xlu0 %v495_v14  ;;  %v369_v26 = vpop.f32.mrb[8].mxu0  ;;  %v409_v27 = vpop.f32.mrb[8].mxu1  ;;  %v501_v60 = vadd.f32 %v1341_v45, %v1339_v44  ;;  %v564_v7 = vmul.f32 %v1341_v45, %v1341_v45  ;;  %v525_v14 = vadd.f32 %v1348_v59, %v1346_v58  ;;  %v579_v24 = vmul.f32 %v1346_v58, %v1346_v58 }
 0x15c   :  { %v371_v31 = vpop.f32.mrb[9].mxu0  ;;  %v411_v32 = vpop.f32.mrb[9].mxu1  ;;  %v370_v10 = vadd.f32 %v369_v26, %v1271_v21  ;;  %v595_v17 = vadd.f32 %v562_v3, %v561_v2  ;;  %v580_v29 = vmul.f32 %v1348_v59, %v1348_v59  ;;  %v454_v2 = vld [vmem:[#allocation5 + $0xd0] sm:$0xff]  ;;  %v455_v3 = vld [vmem:[#allocation5 + $0xd8] sm:$0xff] }
 0x15d   :  { %617 = vadd.xlane.f32.xlu1 %v616_v25  ;;  %v373_v37 = vpop.f32.mrb[10].mxu0  ;;  %v413_v39 = vpop.f32.mrb[10].mxu1  ;;  %v372_v11 = vadd.f32 %v371_v31, %v1274_v22  ;;  %v410_v25 = vadd.f32 %v409_v27, %v1271_v21  ;;  %v412_v26 = vadd.f32 %v411_v32, %v1274_v22  ;;  %v598_v28 = vadd.f32 %v564_v7, %v563_v6 }
 0x15e   :  { %v375_v42 = vpop.f32.mrb[11].mxu0  ;;  %v415_v43 = vpop.f32.mrb[11].mxu1  ;;  %v1388_v30 = vadd.f32 %v436_v15, %v370_v10  ;;  %v619_v27 = vadd.f32 %v578_v23, %v577_v19  ;;  %v414_v56 = vadd.f32 %v413_v39, %v1271_v21  ;;  %v440_v23 = vld [vmem:[#allocation5 + $0x60] sm:$0xff] }
 0x15f   :  { %590 = vadd.xlane.f32.xlu0 %v589_v33  ;;  %v1390_v31 = vadd.f32 %v437_v16, %v372_v11  ;;  %v374_v33 = vadd.f32 %v373_v37, %v1271_v21  ;;  %v1394_v32 = vadd.f32 %v452_v35, %v410_v25  ;;  %v1396_v55 = vadd.f32 %v453_v36, %v412_v26 }
 0x160   :  { %v416_v37 = vadd.f32 %v415_v43, %v1274_v22  ;;  %v1406_v6 = vadd.f32 %v454_v2, %v414_v56  ;;  %v565_v43 = vmul.f32 %v1388_v30, %v1388_v30  ;;  %v442_v56 = vld [vmem:[#allocation5 + $0x70] sm:$0xff] }
 0x161   :  { %499 = vadd.xlane.f32.xlu1 %v498_v34  ;;  %v376_v34 = vadd.f32 %v375_v42, %v1274_v22  ;;  %v504_v42 = vadd.f32 %v1390_v31, %v1388_v30  ;;  %v528_v10 = vadd.f32 %v1396_v55, %v1394_v32  ;;  %v566_v11 = vmul.f32 %v1390_v31, %v1390_v31 }
 0x162   :  { %v1408_v7 = vadd.f32 %v455_v3, %v416_v37  ;;  %v581_v26 = vmul.f32 %v1394_v32, %v1394_v32 }
 0x163   :  { %614 = vadd.xlane.f32.xlu0 %v613_v57  ;;  %v379_v62 = vpop.f32.mrb[12].mxu0  ;;  %v1354_v63 = vpop.f32.mrb[12].mxu1  ;;  %v622_v57 = vadd.f32 %v580_v29, %v579_v24  ;;  %v441_v24 = vld [vmem:[#allocation5 + $0x68] sm:$0xff]  ;;  %v601_v25 = vadd.f32 %v566_v11, %v565_v43  ;;  %v583_v29 = vmul.f32 %v1406_v6, %v1406_v6  ;;  %v458_v43 = vld [vmem:[#allocation5 + $0xf0] sm:$0xff]  ;;  %v459_v11 = vld [vmem:[#allocation5 + $0xf8] sm:$0xff] }
 0x164   :  { %v381_v0 = vpop.f32.mrb[13].mxu0  ;;  %v1356_v1 = vpop.f32.mrb[13].mxu1  ;;  %v380_v16 = vadd.f32 %v379_v62, %v1271_v21  ;;  %v531_v19 = vadd.f32 %v1408_v7, %v1406_v6  ;;  %v420_v62 = vadd.f32 %v1354_v63, %v1271_v21  ;;  %v457_v63 = vld [vmem:[#allocation5 + $0xe8] sm:$0xff] }
 0x165   :  { %502 = vadd.xlane.f32.xlu1 %v501_v60  ;;  %v1362_v4 = vpop.f32.mrb[14].mxu0  ;;  %v1364_v5 = vpop.f32.mrb[14].mxu1  ;;  %v1399_v60 = vadd.f32 %v438_v41, %v374_v33 }
 0x166   :  { %v1370_v8 = vpop.f32.mrb[15].mxu0  ;;  %v1372_v9 = vpop.f32.mrb[15].mxu1  ;;  %v1438_v35 = vadd.f32 %v440_v23, %v380_v16  ;;  %v384_v41 = vadd.f32 %v1362_v4, %v1271_v21  ;;  %v424_v2 = vadd.f32 %v1364_v5, %v1271_v21 }
 0x167   :  { %523 = vadd.xlane.f32.xlu0 %v522_v61  ;;  %v1401_v61 = vadd.f32 %v439_v48, %v376_v34  ;;  %v584_v34 = vmul.f32 %v1408_v7, %v1408_v7  ;;  %v386_v48 = vadd.f32 %v1370_v8, %v1274_v22  ;;  %v426_v8 = vadd.f32 %v1372_v9, %v1274_v22 }
 0x169   :  { %526 = vadd.xlane.f32.xlu1 %v525_v14  ;;  %v507_v39 = vadd.f32 %v1401_v61, %v1399_v60  ;;  %v567_v14 = vmul.f32 %v1399_v60, %v1399_v60  ;;  %v568_v15 = vmul.f32 %v1401_v61, %v1401_v61  ;;  %v628_v3 = vadd.f32 %v584_v34, %v583_v29 }
 0x16b   :  { %596 = vadd.xlane.f32.xlu0 %v595_v17  ;;  %v382_v17 = vadd.f32 %v381_v0, %v1274_v22  ;;  %v422_v0 = vadd.f32 %v1356_v1, %v1274_v22  ;;  %v604_v33 = vadd.f32 %v568_v15, %v567_v14  ;;  %v1460_v14 = vadd.f32 %v458_v43, %v424_v2 }
 0x16c   :  { %v1462_v15 = vadd.f32 %v459_v11, %v426_v8  ;;  %v569_v22 = vmul.f32 %v1438_v35, %v1438_v35 }
 0x16d   :  { %599 = vadd.xlane.f32.xlu1 %v598_v28  ;;  %v582_v28 = vmul.f32 %v1396_v55, %v1396_v55  ;;  %v1440_v36 = vadd.f32 %v441_v24, %v382_v17 }
 0x16e   :  { %v537_v16 = vadd.f32 %v1462_v15, %v1460_v14  ;;  %v588_v29 = vmul.f32 %v1462_v15, %v1462_v15 }
 0x16f   :  { %620 = vadd.xlane.f32.xlu0 %v619_v27  ;;  %v456_v27 = vld [vmem:[#allocation5 + $0xe0] sm:$0xff]  ;;  %v625_v1 = vadd.f32 %v582_v28, %v581_v26  ;;  %v570_v9 = vmul.f32 %v1440_v36, %v1440_v36  ;;  %v587_v28 = vmul.f32 %v1460_v14, %v1460_v14 }
 0x170   :  { %v1446_v37 = vadd.f32 %v456_v27, %v420_v62 }
 0x171   :  { %623 = vadd.xlane.f32.xlu1 %v622_v57  ;;  %v443_v57 = vld [vmem:[#allocation5 + $0x78] sm:$0xff]  ;;  %v607_v23 = vadd.f32 %v570_v9, %v569_v22 }
 0x172   :  { %v1454_v4 = vadd.f32 %v443_v57, %v386_v48  ;;  %v585_v24 = vmul.f32 %v1446_v37, %v1446_v37 }
 0x173   :  { %505 = vadd.xlane.f32.xlu0 %v504_v42  ;;  %v1448_v42 = vadd.f32 %v457_v63, %v422_v0  ;;  %v634_v0 = vadd.f32 %v588_v29, %v587_v28 }
 0x175   :  { %508 = vadd.xlane.f32.xlu1 %v507_v39  ;;  %v1452_v39 = vadd.f32 %v442_v56, %v384_v41  ;;  %v534_v5 = vadd.f32 %v1448_v42, %v1446_v37 }
 0x177   :  { %529 = vadd.xlane.f32.xlu0 %v528_v10  ;;  %v510_v10 = vadd.f32 %v1440_v36, %v1438_v35  ;;  %v513_v21 = vadd.f32 %v1454_v4, %v1452_v39  ;;  %v571_v17 = vmul.f32 %v1452_v39, %v1452_v39 }
 0x179   :  { %532 = vadd.xlane.f32.xlu1 %v531_v19  ;;  %v572_v19 = vmul.f32 %v1454_v4, %v1454_v4 }
 0x17b   :  { %602 = vadd.xlane.f32.xlu0 %v601_v25  ;;  %v586_v25 = vmul.f32 %v1448_v42, %v1448_v42  ;;  %v610_v26 = vadd.f32 %v572_v19, %v571_v17 }
 0x17d   :  { %605 = vadd.xlane.f32.xlu1 %v604_v33  ;;  %v631_v62 = vadd.f32 %v586_v25, %v585_v24 }
 0x17f   :  { %626 = vadd.xlane.f32.xlu0 %v625_v1 }
 0x181   :  { %629 = vadd.xlane.f32.xlu1 %v628_v3 }
 0x183   :  { %511 = vadd.xlane.f32.xlu0 %v510_v10 }
 0x185   :  { %514 = vadd.xlane.f32.xlu1 %v513_v21 }
 0x187   :  { %535 = vadd.xlane.f32.xlu0 %v534_v5 }
 0x189   :  { %538 = vadd.xlane.f32.xlu1 %v537_v16 }
 0x18b   :  { %608 = vadd.xlane.f32.xlu0 %v607_v23 }
 0x18d   :  { %611 = vadd.xlane.f32.xlu1 %v610_v26 }
 0x18f   :  { %632 = vadd.xlane.f32.xlu0 %v631_v62 }
 0x191   :  { %635 = vadd.xlane.f32.xlu1 %v634_v0 }
 0x1e0   :  { %v494_v33 = vpop.xlane.xlu0 %493 }
 0x1e1   :  { %v1488_v56 = vmul.f32 0.00390625, %v494_v33 }
 0x1e2   :  { %v521_v34 = vpop.xlane.xlu1 %520 }
 0x1e3   :  { %v1486_v27 = vmul.f32 0.00390625, %v521_v34  ;;  %v653_v5 = vmul.f32 %v1488_v56, %v1488_v56 }
 0x1e4   :  { %v518_v41 = vpop.xlane.xlu0 %517 }
 0x1e5   :  { %v662_v8 = vmul.f32 %v1486_v27, %v1486_v27  ;;  %v1498_v9 = vmul.f32 0.00390625, %v518_v41  ;;  %v934_v41 = vld [vmem:[%s1714_s3 + $0x2] ss:$4 sm:$0x3] }
 0x1e6   :  { %v594_v48 = vpop.xlane.xlu1 %593 }
 0x1e7   :  { %v638_v2 = vmul.f32 0.00390625, %v594_v48  ;;  %v661_v29 = vmul.f32 %v1498_v9, %v1498_v9 }
 0x1e8   :  { %v497_v63 = vpop.xlane.xlu0 %496 }
 0x1e9   :  { %v1490_v57 = vmul.f32 0.00390625, %v497_v63 }
 0x1ea   :  { %v618_v1 = vpop.xlane.xlu1 %617 }
 0x1eb   :  { %v654_v3 = vmul.f32 %v1490_v57, %v1490_v57  ;;  %v646_v10 = vmul.f32 0.00390625, %v618_v1  ;;  %v933_v1 = vld [vmem:[%s1714_s3 + $0x1] ss:$4 sm:$0x3]  ;;  %s1188_s3 = smov [#allocation8]  }
 0x1ec   :  { %v591_v43 = vpop.xlane.xlu0 %590  ;;  %s920_s8 = sshll.u32 %s1188_s3, 4  ;;  %s921_s8 = int_to_ptr.vmem [resolvable:$true] %s920_s8 }
 0x1ed   :  { %v670_v11 = vsub.f32 %v638_v2, %v654_v3  ;;  %v678_v21 = vsub.f32 %v646_v10, %v662_v8  ;;  %v637_v22 = vmul.f32 0.00390625, %v591_v43  ;;  %v1513_v10 = vrot.slane %v934_v41, %v1263_v18  ;;  %s1153_s9 = scalar_lea.vmem %s921_s8, 4096  ;;  %p1158_p11 = scmp.lt.s32.totalorder %s921_s8, %s921_s8 }
 0x1ee   :  { %v500_v16 = vpop.xlane.xlu1 %499  ;;  %v1516_v43 = vrot.slane %v934_v41, %v1268_v20  ;;  %p1154_p10 = scmp.ne.s32.totalorder %s921_s8, %s1153_s9  ;;  %p1159_p12 = scmp.lt.s32.totalorder %s1153_s9, %s1153_s9 }
 0x1ef   :  { %v686_v17 = vmax.f32 %v670_v11, 0.0  ;;  %v694_v19 = vmax.f32 %v678_v21, 0.0  ;;  %v669_v23 = vsub.f32 %v637_v22, %v653_v5  ;;  %v1505_v63 = vmul.f32 0.00390625, %v500_v16 }
 0x1f0   :  { %v615_v24 = vpop.xlane.xlu0 %614  ;;  %v1519_v5 = vrot.slane %v933_v1, %v1263_v18  ;;  %v1522_v22 = vrot.slane %v933_v1, %v1268_v20  ;;  %v751_v18 = vsub.f32 %v1292_v51, %v1486_v27  ;;  %v750_v51 = vsub.f32 %v1294_v52, %v1498_v9  ;;  %p1160_p13 = por %p1159_p12, %p1158_p11 }
 0x1f1   :  { %v702_v25 = vadd.f32 1e-06, %v686_v17  ;;  %v710_v26 = vadd.f32 1e-06, %v694_v19  ;;  %v685_v28 = vmax.f32 %v669_v23, 0.0  ;;  %v645_v62 = vmul.f32 0.00390625, %v615_v24 }
 0x1f2   :  { %v503_v0 = vpop.xlane.xlu1 %502  ;;  %v655_v16 = vmul.f32 %v1505_v63, %v1505_v63  ;;  %v733_v19 = vsub.f32 %v1280_v38, %v1488_v56  ;;  %v734_v23 = vsub.f32 %v1284_v46, %v1488_v56  ;;  %v749_v38 = vsub.f32 %v1288_v49, %v1498_v9  ;;  %p1161_p0 = pnand %p1160_p13, %p1154_p10 }
 0x1f3   :  { %1055 = vrsqrt.f32 %v702_v25  ;;  %v701_v33 = vadd.f32 1e-06, %v685_v28  ;;  %v677_v34 = vsub.f32 %v645_v62, %v661_v29  ;;  %v1510_v8 = vmul.f32 0.00390625, %v503_v0 }
 0x1f4   :  { %1057 = vrsqrt.f32 %v710_v26  ;;  %v524_v48 = vpop.xlane.xlu0 %523  ;;  %v752_v29 = vsub.f32 %v1298_v54, %v1486_v27  ;;  %v735_v46 = vsub.f32 %v1290_v50, %v1490_v57  ;;  %v736_v56 = vsub.f32 %v1296_v53, %v1490_v57 }
 0x1f5   :  { %1059 = vrsqrt.f32 %v701_v33  ;;  %v693_v2 = vmax.f32 %v677_v34, 0.0  ;;  %v1530_v24 = vmul.f32 0.00390625, %v524_v48  ;;  %v656_v20 = vmul.f32 %v1510_v8, %v1510_v8 }
 0x1f6   :  { %v527_v3 = vpop.xlane.xlu1 %526 }
 0x1f7   :  { %v709_v11 = vadd.f32 1e-06, %v693_v2  ;;  %v1546_v33 = vmul.f32 0.00390625, %v527_v3  ;;  %v663_v49 = vmul.f32 %v1530_v24, %v1530_v24 }
 0x1f8   :  { %v597_v21 = vpop.xlane.xlu0 %596 }
 0x1f9   :  { %v639_v17 = vmul.f32 0.00390625, %v597_v21  ;;  %1061 = vrsqrt.f32 %v709_v11 }
 0x1fa   :  { %v600_v25 = vpop.xlane.xlu1 %599 }
 0x1fb   :  { %v671_v26 = vsub.f32 %v639_v17, %v655_v16  ;;  %v640_v28 = vmul.f32 0.00390625, %v600_v25 }
 0x1fc   :  { %v621_v62 = vpop.xlane.xlu0 %620 }
 0x1fd   :  { %v1056_v0 = vpop.eup %1055  ;;  %v687_v34 = vmax.f32 %v671_v26, 0.0  ;;  %v672_v48 = vsub.f32 %v640_v28, %v656_v20  ;;  %v647_v1 = vmul.f32 0.00390625, %v621_v62 }
 0x1fe   :  { %v1058_v41 = vpop.eup %1057  ;;  %v767_v54 = vmul.f32 %v1056_v0, %v735_v46  ;;  %v768_v27 = vmul.f32 %v1056_v0, %v736_v56  ;;  %v624_v50 = vpop.xlane.xlu1 %623 }
 0x1ff   :  { %v1060_v2 = vpop.eup %1059  ;;  %v783_v11 = vmul.f32 %v1058_v41, %v751_v18  ;;  %v784_v53 = vmul.f32 %v1058_v41, %v752_v29  ;;  %v703_v57 = vadd.f32 1e-06, %v687_v34  ;;  %v688_v21 = vmax.f32 %v672_v48, 0.0 }
 0x200   :  { %v810_v16 = vmul.f32 %v1519_v5, %v767_v54  ;;  %v811_v52 = vmul.f32 %v1522_v22, %v768_v27  ;;  %v765_v9 = vmul.f32 %v1060_v2, %v733_v19  ;;  %v766_v3 = vmul.f32 %v1060_v2, %v734_v23  ;;  %v506_v17 = vpop.xlane.xlu0 %505 }
 0x201   :  { %v826_v25 = vmul.f32 %v1519_v5, %v783_v11  ;;  %v827_v26 = vmul.f32 %v1522_v22, %v784_v53  ;;  %1063 = vrsqrt.f32 %v703_v57  ;;  %v704_v20 = vadd.f32 1e-06, %v688_v21 }
 0x202   :  { %v853_v28 = vadd.f32 %v1513_v10, %v810_v16  ;;  %v854_v18 = vadd.f32 %v1516_v43, %v811_v52  ;;  %v808_v29 = vmul.f32 %v1519_v5, %v765_v9  ;;  %v809_v46 = vmul.f32 %v1522_v22, %v766_v3  ;;  %v509_v56 = vpop.xlane.xlu1 %508 }
 0x203   :  { %v869_v62 = vadd.f32 %v1513_v10, %v826_v25  ;;  %v870_v19 = vadd.f32 %v1516_v43, %v827_v26  ;;  %1065 = vrsqrt.f32 %v704_v20  ;;  %v679_v23 = vsub.f32 %v647_v1, %v663_v49  ;;  %v1062_v0 = vpop.eup %1061 }
 0x204   :  { %885 = vst [vmem:[#allocation8 + $0x10] sm:$0xff] %v853_v28  ;;  %886 = vst [vmem:[#allocation8 + $0x18] sm:$0xff] %v854_v18  ;;  %v851_v34 = vadd.f32 %v1513_v10, %v808_v29  ;;  %v852_v48 = vadd.f32 %v1516_v43, %v809_v46  ;;  %v664_v41 = vmul.f32 %v1546_v33, %v1546_v33  ;;  %v648_v54 = vmul.f32 0.00390625, %v624_v50  ;;  %v530_v27 = vpop.xlane.xlu0 %529 }
 0x205   :  { %901 = vst [vmem:[#allocation8 + $0x90] sm:$0xff] %v869_v62  ;;  %902 = vst [vmem:[#allocation8 + $0x98] sm:$0xff] %v870_v19  ;;  %v781_v2 = vmul.f32 %v1062_v0, %v749_v38  ;;  %v782_v11 = vmul.f32 %v1062_v0, %v750_v51  ;;  %v695_v53 = vmax.f32 %v679_v23, 0.0  ;;  %v1564_v1 = vmul.f32 0.00390625, %v506_v17 }
 0x206   :  { %883 = vst [vmem:[#allocation8] sm:$0xff] %v851_v34  ;;  %884 = vst [vmem:[#allocation8 + $0x8] sm:$0xff] %v852_v48  ;;  %v680_v49 = vsub.f32 %v648_v54, %v664_v41  ;;  %v533_v57 = vpop.xlane.xlu1 %532  ;;  %v1568_v9 = vmul.f32 0.00390625, %v509_v56  ;;  %v737_v50 = vsub.f32 %v1318_v12, %v1505_v63  ;;  %v1572_v38 = vmul.f32 0.00390625, %v530_v27 }
 0x207   :  { %v824_v21 = vmul.f32 %v1519_v5, %v781_v2  ;;  %v825_v16 = vmul.f32 %v1522_v22, %v782_v11  ;;  %v711_v52 = vadd.f32 1e-06, %v695_v53  ;;  %v1576_v26 = vmul.f32 0.00390625, %v533_v57 }
 0x208   :  { %v696_v3 = vmax.f32 %v680_v49, 0.0  ;;  %v603_v51 = vpop.xlane.xlu0 %602  ;;  %v738_v20 = vsub.f32 %v1320_v13, %v1505_v63  ;;  %v657_v18 = vmul.f32 %v1564_v1, %v1564_v1  ;;  %v739_v56 = vsub.f32 %v1339_v44, %v1510_v8 }
 0x209   :  { %v867_v25 = vadd.f32 %v1513_v10, %v824_v21  ;;  %v868_v17 = vadd.f32 %v1516_v43, %v825_v16  ;;  %1067 = vrsqrt.f32 %v711_v52  ;;  %v641_v29 = vmul.f32 0.00390625, %v603_v51 }
 0x20a   :  { %v712_v28 = vadd.f32 1e-06, %v696_v3  ;;  %v606_v12 = vpop.xlane.xlu1 %605  ;;  %v740_v62 = vsub.f32 %v1341_v45, %v1510_v8  ;;  %v658_v19 = vmul.f32 %v1568_v9, %v1568_v9  ;;  %v665_v54 = vmul.f32 %v1572_v38, %v1572_v38 }
 0x20b   :  { %v1064_v46 = vpop.eup %1063  ;;  %899 = vst [vmem:[#allocation8 + $0x80] sm:$0xff] %v867_v25  ;;  %900 = vst [vmem:[#allocation8 + $0x88] sm:$0xff] %v868_v17  ;;  %v642_v23 = vmul.f32 0.00390625, %v606_v12  ;;  %v673_v0 = vsub.f32 %v641_v29, %v657_v18  ;;  %v666_v44 = vmul.f32 %v1576_v26, %v1576_v26  ;;  %v753_v29 = vsub.f32 %v1336_v40, %v1530_v24 }
 0x20c   :  { %v769_v13 = vmul.f32 %v1064_v46, %v737_v50  ;;  %v770_v63 = vmul.f32 %v1064_v46, %v738_v20  ;;  %1069 = vrsqrt.f32 %v712_v28  ;;  %v627_v34 = vpop.xlane.xlu0 %626  ;;  %v754_v12 = vsub.f32 %v1343_v47, %v1530_v24 }
 0x20d   :  { %v1066_v48 = vpop.eup %1065  ;;  %v674_v41 = vsub.f32 %v642_v23, %v658_v19  ;;  %v649_v27 = vmul.f32 0.00390625, %v627_v34  ;;  %v689_v49 = vmax.f32 %v673_v0, 0.0  ;;  %v755_v47 = vsub.f32 %v1346_v58, %v1546_v33 }
 0x20e   :  { %v812_v45 = vmul.f32 %v1519_v5, %v769_v13  ;;  %v813_v8 = vmul.f32 %v1522_v22, %v770_v63  ;;  %v771_v2 = vmul.f32 %v1066_v48, %v739_v56  ;;  %v772_v11 = vmul.f32 %v1066_v48, %v740_v62  ;;  %v630_v53 = vpop.xlane.xlu1 %629 }
 0x20f   :  { %v690_v57 = vmax.f32 %v674_v41, 0.0  ;;  %v681_v21 = vsub.f32 %v649_v27, %v665_v54  ;;  %v650_v16 = vmul.f32 0.00390625, %v630_v53  ;;  %v705_v17 = vadd.f32 1e-06, %v689_v49 }
 0x210   :  { %v855_v52 = vadd.f32 %v1513_v10, %v812_v45  ;;  %v856_v50 = vadd.f32 %v1516_v43, %v813_v8  ;;  %v814_v3 = vmul.f32 %v1519_v5, %v771_v2  ;;  %v815_v51 = vmul.f32 %v1522_v22, %v772_v11  ;;  %v512_v25 = vpop.xlane.xlu0 %511 }
 0x211   :  { %v706_v20 = vadd.f32 1e-06, %v690_v57  ;;  %v697_v28 = vmax.f32 %v681_v21, 0.0  ;;  %v682_v18 = vsub.f32 %v650_v16, %v666_v44  ;;  %1071 = vrsqrt.f32 %v705_v17 }
 0x212   :  { %887 = vst [vmem:[#allocation8 + $0x20] sm:$0xff] %v855_v52  ;;  %888 = vst [vmem:[#allocation8 + $0x28] sm:$0xff] %v856_v50  ;;  %v857_v46 = vadd.f32 %v1513_v10, %v814_v3  ;;  %v858_v56 = vadd.f32 %v1516_v43, %v815_v51  ;;  %v515_v62 = vpop.xlane.xlu1 %514  ;;  %v756_v24 = vsub.f32 %v1348_v59, %v1546_v33  ;;  %v1610_v27 = vmul.f32 0.00390625, %v512_v25 }
 0x213   :  { %v1068_v19 = vpop.eup %1067  ;;  %v713_v23 = vadd.f32 1e-06, %v697_v28  ;;  %v698_v13 = vmax.f32 %v682_v18, 0.0  ;;  %1073 = vrsqrt.f32 %v706_v20  ;;  %v1612_v2 = vmul.f32 0.00390625, %v515_v62 }
 0x214   :  { %889 = vst [vmem:[#allocation8 + $0x30] sm:$0xff] %v857_v46  ;;  %890 = vst [vmem:[#allocation8 + $0x38] sm:$0xff] %v858_v56  ;;  %v785_v63 = vmul.f32 %v1068_v19, %v753_v29  ;;  %v786_v0 = vmul.f32 %v1068_v19, %v754_v12  ;;  %v536_v40 = vpop.xlane.xlu0 %535  ;;  %v741_v59 = vsub.f32 %v1388_v30, %v1564_v1 }
 0x215   :  { %1075 = vrsqrt.f32 %v713_v23  ;;  %v714_v34 = vadd.f32 1e-06, %v698_v13  ;;  %v742_v33 = vsub.f32 %v1390_v31, %v1564_v1  ;;  %v743_v21 = vsub.f32 %v1399_v60, %v1568_v9 }
 0x216   :  { %v1070_v48 = vpop.eup %1069  ;;  %v828_v41 = vmul.f32 %v1519_v5, %v785_v63  ;;  %v829_v54 = vmul.f32 %v1522_v22, %v786_v0  ;;  %v539_v44 = vpop.xlane.xlu1 %538  ;;  %v1624_v16 = vmul.f32 0.00390625, %v536_v40  ;;  %v744_v52 = vsub.f32 %v1401_v61, %v1568_v9 }
 0x217   :  { %v787_v45 = vmul.f32 %v1070_v48, %v755_v47  ;;  %v788_v8 = vmul.f32 %v1070_v48, %v756_v24  ;;  %1077 = vrsqrt.f32 %v714_v34  ;;  %v1628_v50 = vmul.f32 0.00390625, %v539_v44 }
 0x218   :  { %v871_v58 = vadd.f32 %v1513_v10, %v828_v41  ;;  %v872_v11 = vadd.f32 %v1516_v43, %v829_v54  ;;  %v609_v53 = vpop.xlane.xlu0 %608  ;;  %v659_v30 = vmul.f32 %v1610_v27, %v1610_v27  ;;  %v660_v60 = vmul.f32 %v1612_v2, %v1612_v2 }
 0x219   :  { %v830_v49 = vmul.f32 %v1519_v5, %v787_v45  ;;  %v831_v57 = vmul.f32 %v1522_v22, %v788_v8  ;;  %v643_v31 = vmul.f32 0.00390625, %v609_v53  ;;  %v757_v17 = vsub.f32 %v1394_v32, %v1572_v38 }
 0x21a   :  { %903 = vst [vmem:[#allocation8 + $0xa0] sm:$0xff] %v871_v58  ;;  %904 = vst [vmem:[#allocation8 + $0xa8] sm:$0xff] %v872_v11  ;;  %v612_v1 = vpop.xlane.xlu1 %611  ;;  %v758_v61 = vsub.f32 %v1396_v55, %v1572_v38  ;;  %v759_v9 = vsub.f32 %v1406_v6, %v1576_v26  ;;  %v760_v29 = vsub.f32 %v1408_v7, %v1576_v26 }
 0x21b   :  { %v873_v3 = vadd.f32 %v1513_v10, %v830_v49  ;;  %v874_v51 = vadd.f32 %v1516_v43, %v831_v57  ;;  %v644_v25 = vmul.f32 0.00390625, %v612_v1  ;;  %v675_v20 = vsub.f32 %v643_v31, %v659_v30  ;;  %v1072_v18 = vpop.eup %1071 }
 0x21c   :  { %v633_v28 = vpop.xlane.xlu0 %632  ;;  %v667_v46 = vmul.f32 %v1624_v16, %v1624_v16  ;;  %v773_v62 = vmul.f32 %v1072_v18, %v741_v59  ;;  %v774_v19 = vmul.f32 %v1072_v18, %v742_v33  ;;  %v668_v6 = vmul.f32 %v1628_v50, %v1628_v50 }
 0x21d   :  { %905 = vst [vmem:[#allocation8 + $0xb0] sm:$0xff] %v873_v3  ;;  %906 = vst [vmem:[#allocation8 + $0xb8] sm:$0xff] %v874_v51  ;;  %v676_v12 = vsub.f32 %v644_v25, %v660_v60  ;;  %v651_v56 = vmul.f32 0.00390625, %v633_v28  ;;  %v1074_v32 = vpop.eup %1073  ;;  %v691_v55 = vmax.f32 %v675_v20, 0.0  ;;  %v746_v20 = vsub.f32 %v1440_v36, %v1610_v27 }
 0x21e   :  { %v775_v23 = vmul.f32 %v1074_v32, %v743_v21  ;;  %v776_v13 = vmul.f32 %v1074_v32, %v744_v52  ;;  %v816_v40 = vmul.f32 %v1519_v5, %v773_v62  ;;  %v817_v7 = vmul.f32 %v1522_v22, %v774_v19  ;;  %v636_v11 = vpop.xlane.xlu1 %635 }
 0x21f   :  { %v1076_v38 = vpop.eup %1075  ;;  %v692_v63 = vmax.f32 %v676_v12, 0.0  ;;  %v683_v0 = vsub.f32 %v651_v56, %v667_v46  ;;  %v707_v41 = vadd.f32 1e-06, %v691_v55  ;;  %v652_v1 = vmul.f32 0.00390625, %v636_v11 }
 0x220   :  { %v789_v26 = vmul.f32 %v1076_v38, %v757_v17  ;;  %v790_v47 = vmul.f32 %v1076_v38, %v758_v61  ;;  %v818_v34 = vmul.f32 %v1519_v5, %v775_v23  ;;  %v819_v48 = vmul.f32 %v1522_v22, %v776_v13 }
 0x221   :  { %v1078_v24 = vpop.eup %1077  ;;  %v708_v54 = vadd.f32 1e-06, %v692_v63  ;;  %v859_v44 = vadd.f32 %v1513_v10, %v816_v40  ;;  %v860_v45 = vadd.f32 %v1516_v43, %v817_v7  ;;  %1079 = vrsqrt.f32 %v707_v41 }
 0x222   :  { %v832_v8 = vmul.f32 %v1519_v5, %v789_v26  ;;  %v833_v58 = vmul.f32 %v1522_v22, %v790_v47  ;;  %v861_v59 = vadd.f32 %v1513_v10, %v818_v34  ;;  %v862_v33 = vadd.f32 %v1516_v43, %v819_v48 }
 0x223   :  { %v791_v53 = vmul.f32 %v1078_v24, %v759_v9  ;;  %v792_v49 = vmul.f32 %v1078_v24, %v760_v29  ;;  %891 = vst [vmem:[#allocation8 + $0x40] sm:$0xff] %v859_v44  ;;  %892 = vst [vmem:[#allocation8 + $0x48] sm:$0xff] %v860_v45  ;;  %v699_v52 = vmax.f32 %v683_v0, 0.0  ;;  %1081 = vrsqrt.f32 %v708_v54 }
 0x224   :  { %v875_v57 = vadd.f32 %v1513_v10, %v832_v8  ;;  %v876_v21 = vadd.f32 %v1516_v43, %v833_v58  ;;  %893 = vst [vmem:[#allocation8 + $0x50] sm:$0xff] %v861_v59  ;;  %894 = vst [vmem:[#allocation8 + $0x58] sm:$0xff] %v862_v33  ;;  %v684_v25 = vsub.f32 %v652_v1, %v668_v6 }
 0x225   :  { %v834_v30 = vmul.f32 %v1519_v5, %v791_v53  ;;  %v835_v31 = vmul.f32 %v1522_v22, %v792_v49  ;;  %v715_v3 = vadd.f32 1e-06, %v699_v52  ;;  %v745_v9 = vsub.f32 %v1438_v35, %v1610_v27 }
 0x226   :  { %907 = vst [vmem:[#allocation8 + $0xc0] sm:$0xff] %v875_v57  ;;  %908 = vst [vmem:[#allocation8 + $0xc8] sm:$0xff] %v876_v21  ;;  %v700_v17 = vmax.f32 %v684_v25, 0.0  ;;  %v747_v18 = vsub.f32 %v1452_v39, %v1612_v2  ;;  %v748_v29 = vsub.f32 %v1454_v4, %v1612_v2  ;;  %v761_v19 = vsub.f32 %v1446_v37, %v1624_v16 }
 0x227   :  { %v877_v51 = vadd.f32 %v1513_v10, %v834_v30  ;;  %v878_v60 = vadd.f32 %v1516_v43, %v835_v31  ;;  %1083 = vrsqrt.f32 %v715_v3  ;;  %v762_v35 = vsub.f32 %v1448_v42, %v1624_v16 }
 0x228   :  { %v716_v61 = vadd.f32 1e-06, %v700_v17  ;;  %v763_v63 = vsub.f32 %v1460_v14, %v1628_v50  ;;  %v764_v0 = vsub.f32 %v1462_v15, %v1628_v50 }
 0x229   :  { %909 = vst [vmem:[#allocation8 + $0xd0] sm:$0xff] %v877_v51  ;;  %910 = vst [vmem:[#allocation8 + $0xd8] sm:$0xff] %v878_v60 }
 0x22a   :  { %1085 = vrsqrt.f32 %v716_v61 }
 0x22b   :  { %v1080_v28 = vpop.eup %1079 }
 0x22c   :  { %v777_v46 = vmul.f32 %v1080_v28, %v745_v9  ;;  %v778_v56 = vmul.f32 %v1080_v28, %v746_v20 }
 0x22d   :  { %v1082_v12 = vpop.eup %1081 }
 0x22e   :  { %v779_v32 = vmul.f32 %v1082_v12, %v747_v18  ;;  %v780_v62 = vmul.f32 %v1082_v12, %v748_v29  ;;  %v820_v36 = vmul.f32 %v1519_v5, %v777_v46  ;;  %v821_v27 = vmul.f32 %v1522_v22, %v778_v56 }
 0x230   :  { %v822_v39 = vmul.f32 %v1519_v5, %v779_v32  ;;  %v823_v4 = vmul.f32 %v1522_v22, %v780_v62  ;;  %v863_v2 = vadd.f32 %v1513_v10, %v820_v36  ;;  %v864_v6 = vadd.f32 %v1516_v43, %v821_v27 }
 0x231   :  { %v1084_v55 = vpop.eup %1083 }
 0x232   :  { %v793_v38 = vmul.f32 %v1084_v55, %v761_v19  ;;  %v794_v23 = vmul.f32 %v1084_v55, %v762_v35  ;;  %v865_v37 = vadd.f32 %v1513_v10, %v822_v39  ;;  %v866_v13 = vadd.f32 %v1516_v43, %v823_v4  ;;  %895 = vst [vmem:[#allocation8 + $0x60] sm:$0xff] %v863_v2 }
 0x233   :  { %896 = vst [vmem:[#allocation8 + $0x68] sm:$0xff] %v864_v6 }
 0x234   :  { %v836_v42 = vmul.f32 %v1519_v5, %v793_v38  ;;  %v837_v16 = vmul.f32 %v1522_v22, %v794_v23  ;;  %897 = vst [vmem:[#allocation8 + $0x70] sm:$0xff] %v865_v37  ;;  %898 = vst [vmem:[#allocation8 + $0x78] sm:$0xff] %v866_v13  ;;  %v1086_v40 = vpop.eup %1085 }
 0x235   :  { %v795_v47 = vmul.f32 %v1086_v40, %v763_v63  ;;  %v796_v24 = vmul.f32 %v1086_v40, %v764_v0 }
 0x236   :  { %v879_v7 = vadd.f32 %v1513_v10, %v836_v42  ;;  %v880_v26 = vadd.f32 %v1516_v43, %v837_v16 }
 0x237   :  { %v838_v34 = vmul.f32 %v1519_v5, %v795_v47  ;;  %v839_v14 = vmul.f32 %v1522_v22, %v796_v24 }
 0x238   :  { %911 = vst [vmem:[#allocation8 + $0xe0] sm:$0xff] %v879_v7  ;;  %912 = vst [vmem:[#allocation8 + $0xe8] sm:$0xff] %v880_v26 }
 0x239   :  { %v881_v48 = vadd.f32 %v1513_v10, %v838_v34  ;;  %v882_v15 = vadd.f32 %v1516_v43, %v839_v14 }
 0x23b   :  { %913 = vst [vmem:[#allocation8 + $0xf0] sm:$0xff] %v881_v48  ;;  %914 = vst [vmem:[#allocation8 + $0xf8] sm:$0xff] %v882_v15 }
 0x23c   :  { %1164 = shalt.err (!%p1161_p0)
}
 0x23d   :  { %s1165_s12 = scalar_lea.hbm %s1715_s4, 4096 }
 0x23e   :  { %p1166_p1 = scmp.ne.s32.totalorder %s1715_s4, %s1165_s12  ;;  %p1169_p2 = scmp.lt.u32.totalorder %s1165_s12, %s1715_s4 }
 0x240   :  { %p1171_p3 = pnand %p1169_p2, %p1166_p1 }
 0x242   :  { %1174 = shalt.err (!%p1171_p3)
}
 0x243   :  { %926 = dma.vmem_to_hbm [thread:$0]  %s921_s8, 4096, %s1715_s4, [#allocation4], %s1183_s27, %s1183_s27, %s1184_s28  }
 0x244   :  { %1179 = dma.done.wait [#allocation4], 4096  }
 0x245   :  { %1180 = vsyncadd [#allocation4], 4294963200 }
 0x246   :  { %930 = vsyncpa [#allocation3], 1 }
 0x247   :  { %931 = vsyncpa [#allocation6], 1 }
 0x248   :  { %932 = vsyncpa [#allocation4], 1 }

</bundles_post_ra>
